<compile_context>
chip_gen: v7x
topology: tpu7x:2x2x1
jax: 0.10.0
libtpu: 0.0.40
codegen_flags: <defaults>
</compile_context>

<pallas_src>
import numpy as np
import jax
import jax.numpy as jnp
from jax.experimental import pallas as pl
from jax.experimental.pallas import tpu as pltpu


# ----------------------------------------------------------------------------
# Config (mirrors LogMelFeatureExtractionV1Config; deterministic, in-script).
# Only n_fft == 2*hop is assumed (holds for win=10ms / hop=5ms at any rate).
# ----------------------------------------------------------------------------
SAMPLE_RATE = 1600
WIN_SIZE = 0.01            # seconds  -> win length = 16 samples
HOP_SIZE = 0.005           # seconds  -> hop length = 8 samples
F_MIN = 60
F_MAX = 700                # <= sample_rate // 2
MIN_AMP = 1e-10
NUM_FILTERS = 8
CENTER = True

N_FFT = int(WIN_SIZE * SAMPLE_RATE)          # 16
HOP_LENGTH = int(HOP_SIZE * SAMPLE_RATE)     # 8
N_FREQ = N_FFT // 2 + 1                      # 9 (onesided)
NF_PAD = ((N_FREQ + 7) // 8) * 8             # 16 (freq axis padded to sublanes)

# The chunk-based framing assumes a 50% overlap STFT (win == 2 * hop).
# TODO(synk): generalize framing to n_fft == k*hop with k > 2.
assert N_FFT == 2 * HOP_LENGTH

MAX_TILE_LANES = 8192      # frames per grid step (lane axis), multiple of 128
                           # (above ~8192, also set vmem_limit_bytes explicitly)


# ----------------------------------------------------------------------------
# Deterministic "buffers" (hann window, DFT matrices, librosa mel filterbank)
# ----------------------------------------------------------------------------
def hann_window(n: int) -> np.ndarray:
    # torch.hann_window default is periodic=True
    k = np.arange(n, dtype=np.float64)
    return 0.5 * (1.0 - np.cos(2.0 * np.pi * k / n))


def dft_matrices(n_fft: int, n_freq: int):
    n = np.arange(n_fft, dtype=np.float64)[:, None]
    f = np.arange(n_freq, dtype=np.float64)[None, :]
    ang = 2.0 * np.pi * n * f / n_fft
    return np.cos(ang), -np.sin(ang)          # [n_fft, n_freq] real / imag bases


def _hz_to_mel_slaney(freq):
    freq = np.asarray(freq, dtype=np.float64)
    f_sp = 200.0 / 3.0
    mels = freq / f_sp
    min_log_hz = 1000.0
    min_log_mel = min_log_hz / f_sp
    logstep = np.log(6.4) / 27.0
    log_region = freq >= min_log_hz
    mels = np.where(log_region,
                    min_log_mel + np.log(np.maximum(freq, 1e-12) / min_log_hz) / logstep,
                    mels)
    return mels


def _mel_to_hz_slaney(mels):
    mels = np.asarray(mels, dtype=np.float64)
    f_sp = 200.0 / 3.0
    freqs = f_sp * mels
    min_log_hz = 1000.0
    min_log_mel = min_log_hz / f_sp
    logstep = np.log(6.4) / 27.0
    log_region = mels >= min_log_mel
    freqs = np.where(log_region, min_log_hz * np.exp(logstep * (mels - min_log_mel)), freqs)
    return freqs


def mel_filterbank(sr, n_fft, n_mels, fmin, fmax) -> np.ndarray:
    """librosa.filters.mel (htk=False, norm='slaney'), shape [n_mels, 1 + n_fft//2]."""
    n_freq = n_fft // 2 + 1
    fftfreqs = np.linspace(0.0, sr / 2.0, n_freq)
    mel_min, mel_max = _hz_to_mel_slaney(fmin), _hz_to_mel_slaney(fmax)
    mel_pts = _mel_to_hz_slaney(np.linspace(mel_min, mel_max, n_mels + 2))
    fdiff = np.diff(mel_pts)
    ramps = mel_pts[:, None] - fftfreqs[None, :]
    lower = -ramps[:-2] / fdiff[:-1][:, None]
    upper = ramps[2:] / fdiff[1:][:, None]
    weights = np.maximum(0.0, np.minimum(lower, upper))
    enorm = 2.0 / (mel_pts[2:n_mels + 2] - mel_pts[:n_mels])
    weights = weights * enorm[:, None]
    return weights.astype(np.float64)


def build_kernel_constants():
    """Window-folded, transposed, sublane-padded and chunk-split DFT + mel matrices."""
    win = hann_window(N_FFT)                               # [n_fft]
    cos_m, sin_m = dft_matrices(N_FFT, N_FREQ)             # [n_fft, n_freq]
    dft = np.zeros((2 * NF_PAD, N_FFT), dtype=np.float64)  # [2*NF_PAD, n_fft]
    dft[:N_FREQ, :] = (cos_m * win[:, None]).T             # window folded in
    dft[NF_PAD:NF_PAD + N_FREQ, :] = (sin_m * win[:, None]).T
    mel = mel_filterbank(SAMPLE_RATE, N_FFT, NUM_FILTERS, F_MIN, F_MAX)  # [M, n_freq]
    mel_pad = np.zeros((NUM_FILTERS, NF_PAD), dtype=np.float64)
    mel_pad[:, :N_FREQ] = mel
    # Split along the n_fft axis: first hop samples act on chunk j, second hop
    # samples act on chunk j+1.
    dft_lo = dft[:, :HOP_LENGTH]
    dft_hi = dft[:, HOP_LENGTH:]
    return (dft_lo.astype(np.float32), dft_hi.astype(np.float32),
            mel_pad.astype(np.float32))


# ----------------------------------------------------------------------------
# Pallas kernel: windowed DFT (two small matmuls) -> power -> mel -> log10
# ----------------------------------------------------------------------------
def logmel_kernel(cur_ref, nxt_ref, dft_lo_ref, dft_hi_ref, mel_ref, out_ref):
    """One batch element x one lane-tile of frames.

    cur_ref:    (1, hop, L)       chunk j   = first  half of frame j
    nxt_ref:    (1, hop, L)       chunk j+1 = second half of frame j
    dft_lo_ref: (2*NF_PAD, hop)   window-folded [cos; -sin] basis, first half
    dft_hi_ref: (2*NF_PAD, hop)   window-folded [cos; -sin] basis, second half
    mel_ref:    (n_mels, NF_PAD)  zero-padded slaney mel filterbank
    out_ref:    (1, n_mels, L)    log10(max(min_amp, mel power))
    """
    cur = cur_ref[0]                                      # (hop, L)
    nxt = nxt_ref[0]                                      # (hop, L)

    # Windowed DFT; real and imaginary parts stacked on the sublane axis.
    # Frame = [cur ; nxt] but is never materialized: the concat is folded into
    # the sum of two matmuls.
    dft = jnp.dot(dft_lo_ref[...], cur, preferred_element_type=jnp.float32)
    dft = dft + jnp.dot(dft_hi_ref[...], nxt, preferred_element_type=jnp.float32)

    re = dft[:NF_PAD]
    im = dft[NF_PAD:]
    power = re * re + im * im                             # (NF_PAD, L)

    mel = jnp.dot(mel_ref[...], power,
                  preferred_element_type=jnp.float32)     # (n_mels, L)
    out_ref[0] = jnp.log10(jnp.maximum(jnp.float32(MIN_AMP), mel))


# ----------------------------------------------------------------------------
# Forward pass wrapper
# ----------------------------------------------------------------------------
def _round_up(x: int, m: int) -> int:
    return ((x + m - 1) // m) * m


def log_mel_feature_extraction(raw_audio, length, dft_lo, dft_hi, mel_pad,
                               *, max_tile=MAX_TILE_LANES):
    """
    :param raw_audio: [B, T] float32
    :param length:    [B]    length in samples
    :return: features [B, n_frames, n_mels] float32, lengths in frames [B] int32
    """
    B, T = raw_audio.shape
    hop = HOP_LENGTH
    if CENTER:
        left_pad = N_FFT // 2
        n_frames = 1 + T // hop
        out_length = (length // hop + 1).astype(jnp.int32)
    else:
        left_pad = 0
        n_frames = 1 + (T - N_FFT) // hop
        out_length = ((length - N_FFT) // hop + 1).astype(jnp.int32)

    # Lane tile: as large as possible to amortize the ~0.35us per-grid-step
    # overhead, capped so tiny inputs don't explode in padding.
    tile = min(max_tile, _round_up(n_frames, 128))
    # v7x megacore: keep the ("parallel","parallel") grid at >= 2 steps so both
    # TensorCores get work (B>=2 already guarantees this).
    if B == 1:
        while tile > 128 and -(-n_frames // tile) < 2:
            tile = _round_up(tile // 2, 128)
    n_tiles = -(-n_frames // tile)
    n_frames_pad = n_tiles * tile
    n_chunks = n_frames_pad + 1                 # one extra chunk: last frame's 2nd half
    total_samples = n_chunks * hop

    # constant (zero) padding -> matches torch.stft(pad_mode='constant').
    # One padded buffer, one reshape, two chunk-offset views, two transposes.
    pad_right = total_samples - T - left_pad
    padded = jnp.pad(raw_audio, ((0, 0), (left_pad, max(0, pad_right))))[:, :total_samples]
    chunks = padded.reshape(B, n_chunks, hop)            # chunk c = padded[c*hop : (c+1)*hop]
    # chunk index (== frame index) on lanes, samples-within-chunk on sublanes:
    audio_cur = jnp.transpose(chunks[:, :n_frames_pad, :], (0, 2, 1))  # [B, hop, n_frames_pad]
    audio_nxt = jnp.transpose(chunks[:, 1:, :], (0, 2, 1))             # [B, hop, n_frames_pad]

    flops = 2 * (2 * NF_PAD * N_FFT + NUM_FILTERS * NF_PAD) * n_frames_pad * B
    bytes_accessed = 4 * (audio_cur.size + audio_nxt.size
                          + B * NUM_FILTERS * n_frames_pad
                          + dft_lo.size + dft_hi.size + mel_pad.size)
    cost = pl.CostEstimate(flops=flops,
                           transcendentals=B * NUM_FILTERS * n_frames_pad,
                           bytes_accessed=bytes_accessed)

    out = pl.pallas_call(
        logmel_kernel,
        out_shape=jax.ShapeDtypeStruct((B, NUM_FILTERS, n_frames_pad), jnp.float32),
        grid=(B, n_tiles),
        in_specs=[
            # first halves of frames i*tile .. i*tile+tile-1
            pl.BlockSpec((1, hop, tile), lambda b, i: (b, 0, i)),
            # second halves of the same frames (pre-shifted by one chunk)
            pl.BlockSpec((1, hop, tile), lambda b, i: (b, 0, i)),
            # grid-invariant constants (fixed block index -> fetched once)
            pl.BlockSpec((2 * NF_PAD, hop), lambda b, i: (0, 0)),
            pl.BlockSpec((2 * NF_PAD, hop), lambda b, i: (0, 0)),
            pl.BlockSpec((NUM_FILTERS, NF_PAD), lambda b, i: (0, 0)),
        ],
        out_specs=pl.BlockSpec((1, NUM_FILTERS, tile), lambda b, i: (b, 0, i)),
        compiler_params=pltpu.CompilerParams(
            dimension_semantics=("parallel", "parallel")),
        cost_estimate=cost,
    )(audio_cur, audio_nxt, dft_lo, dft_hi, mel_pad)

    # Module interface is [B, T', F]; slice lanes first, then one transpose.
    # TODO(synk): a consumer that accepts channel-major [B, F, T'] could take
    # `out[:, :, :n_frames]` directly and skip this extra HBM pass.
    feats = jnp.transpose(out[:, :, :n_frames], (0, 2, 1))
    return feats, out_length


# ----------------------------------------------------------------------------
# Pure-JAX reference (independent path: explicit framing, unfolded window)
# ----------------------------------------------------------------------------
def reference(raw_audio, length):
    B, T = raw_audio.shape
    hop = HOP_LENGTH
    pad = N_FFT // 2 if CENTER else 0
    padded = jnp.pad(raw_audio, ((0, 0), (pad, pad)))
    if CENTER:
        n_frames = 1 + T // hop
        out_length = (length // hop + 1).astype(jnp.int32)
    else:
        n_frames = 1 + (T - N_FFT) // hop
        out_length = ((length - N_FFT) // hop + 1).astype(jnp.int32)

    win = jnp.asarray(hann_window(N_FFT).astype(np.float32))
    cos_np, sin_np = dft_matrices(N_FFT, N_FREQ)
    cos_m = jnp.asarray(cos_np.astype(np.float32))
    sin_m = jnp.asarray(sin_np.astype(np.float32))
    mel_b = jnp.asarray(
        mel_filterbank(SAMPLE_RATE, N_FFT, NUM_FILTERS, F_MIN, F_MAX).astype(np.float32))

    idx = jnp.arange(n_frames)[:, None] * hop + jnp.arange(N_FFT)[None, :]
    frames = padded[:, idx] * win                         # [B, n_frames, n_fft]
    re = frames @ cos_m
    im = frames @ sin_m
    power = re * re + im * im
    mel = power @ mel_b.T
    feats = jnp.log10(jnp.maximum(MIN_AMP, mel))
    return feats, out_length


if __name__ == "__main__":
    key = jax.random.PRNGKey(0)
    key1, key2 = jax.random.split(key)

    dft_lo_np, dft_hi_np, mel_pad_np = build_kernel_constants()
    dft_lo = jnp.asarray(dft_lo_np)                       # [2*NF_PAD, hop]
    dft_hi = jnp.asarray(dft_hi_np)                       # [2*NF_PAD, hop]
    mel_pad = jnp.asarray(mel_pad_np)                     # [n_mels, NF_PAD]

    # --- Test 1: small input, single lane-tile grid step per batch element ---
    B, T = 2, 128
    raw_audio = jax.random.normal(key1, (B, T), dtype=jnp.float32)
    length = jnp.array([128, 100], dtype=jnp.int32)

    feats, out_len = log_mel_feature_extraction(raw_audio, length, dft_lo, dft_hi, mel_pad)
    feats = jax.block_until_ready(feats)
    out_len = jax.block_until_ready(out_len)

    ref_feats, ref_len = reference(raw_audio, length)
    np.testing.assert_allclose(np.asarray(feats), np.asarray(ref_feats),
                               rtol=2e-3, atol=2e-3)
    np.testing.assert_array_equal(np.asarray(out_len), np.asarray(ref_len))
    assert feats.shape == (B, 1 + T // HOP_LENGTH, NUM_FILTERS)
    assert out_len.dtype == jnp.int32

    # --- Test 2: multi-tile grid (exercises frames whose second half lives in
    #             the next lane-tile, now handled uniformly by the nxt input) ---
    B2, T2 = 2, 2048
    raw2 = jax.random.normal(key2, (B2, T2), dtype=jnp.float32)
    len2 = jnp.array([2048, 1500], dtype=jnp.int32)
    feats2, out_len2 = log_mel_feature_extraction(raw2, len2, dft_lo, dft_hi, mel_pad,
                                                  max_tile=128)
    feats2 = jax.block_until_ready(feats2)
    out_len2 = jax.block_until_ready(out_len2)

    ref2, ref_len2 = reference(raw2, len2)
    np.testing.assert_allclose(np.asarray(feats2), np.asarray(ref2),
                               rtol=2e-3, atol=2e-3)
    np.testing.assert_array_equal(np.asarray(out_len2), np.asarray(ref_len2))
    assert feats2.shape == (B2, 1 + T2 // HOP_LENGTH, NUM_FILTERS)

    print("KERNEL_OK")
</pallas_src>

<mosaic_0001>
module attributes {stable_mosaic.version = 11 : i64} {
  func.func @logmel_kernel(%arg0: i32, %arg1: i32, %arg2: memref<1x8x128xf32, #tpu.memory_space<vmem>>, %arg3: memref<1x8x128xf32, #tpu.memory_space<vmem>>, %arg4: memref<32x8xf32, #tpu.memory_space<vmem>>, %arg5: memref<32x8xf32, #tpu.memory_space<vmem>>, %arg6: memref<8x16xf32, #tpu.memory_space<vmem>>, %arg7: memref<1x8x128xf32, #tpu.memory_space<vmem>>) attributes {dimension_semantics = [#tpu.dimension_semantics<parallel>, #tpu.dimension_semantics<parallel>], iteration_bounds = array<i64: 2, 1>, scalar_prefetch = 0 : i64, scratch_operands = 0 : i64, tpu.core_type = #tpu.core_type<tc>, window_params = [{transform_indices = @transform_0, window_bounds = array<i64: 1, 8, 128>}, {transform_indices = @transform_1, window_bounds = array<i64: 1, 8, 128>}, {pipeline_mode = #tpu.pipeline_mode<synchronous>, transform_indices = @transform_2, window_bounds = array<i64: 32, 8>}, {pipeline_mode = #tpu.pipeline_mode<synchronous>, transform_indices = @transform_3, window_bounds = array<i64: 32, 8>}, {pipeline_mode = #tpu.pipeline_mode<synchronous>, transform_indices = @transform_4, window_bounds = array<i64: 8, 16>}, {transform_indices = @transform_5, window_bounds = array<i64: 1, 8, 128>}]} {
    %c0 = arith.constant 0 : index
    %c0_0 = arith.constant 0 : index
    %c0_1 = arith.constant 0 : index
    %0 = vector.load %arg2[%c0, %c0_0, %c0_1] : memref<1x8x128xf32, #tpu.memory_space<vmem>>, vector<1x8x128xf32>
    %1 = vector.shape_cast %0 : vector<1x8x128xf32> to vector<8x128xf32>
    %c0_2 = arith.constant 0 : index
    %c0_3 = arith.constant 0 : index
    %c0_4 = arith.constant 0 : index
    %2 = vector.load %arg3[%c0_2, %c0_3, %c0_4] : memref<1x8x128xf32, #tpu.memory_space<vmem>>, vector<1x8x128xf32>
    %3 = vector.shape_cast %2 : vector<1x8x128xf32> to vector<8x128xf32>
    %c0_5 = arith.constant 0 : index
    %c0_6 = arith.constant 0 : index
    %4 = vector.load %arg4[%c0_5, %c0_6] : memref<32x8xf32, #tpu.memory_space<vmem>>, vector<32x8xf32>
    %cst = arith.constant dense<0.000000e+00> : vector<32x128xf32>
    %5 = tpu.matmul %4, %1, %cst {dimension_numbers = #tpu.dot_dimension_numbers<[1], [0], [0], [1], [0, 0, 1, 1], [], []>} : vector<32x8xf32>, vector<8x128xf32>, vector<32x128xf32> -> vector<32x128xf32>
    %c0_7 = arith.constant 0 : index
    %c0_8 = arith.constant 0 : index
    %6 = vector.load %arg5[%c0_7, %c0_8] : memref<32x8xf32, #tpu.memory_space<vmem>>, vector<32x8xf32>
    %cst_9 = arith.constant dense<0.000000e+00> : vector<32x128xf32>
    %7 = tpu.matmul %6, %3, %cst_9 {dimension_numbers = #tpu.dot_dimension_numbers<[1], [0], [0], [1], [0, 0, 1, 1], [], []>} : vector<32x8xf32>, vector<8x128xf32>, vector<32x128xf32> -> vector<32x128xf32>
    %8 = arith.addf %5, %7 : vector<32x128xf32>
    %9 = vector.extract_strided_slice %8 {offsets = [0, 0], sizes = [16, 128], strides = [1, 1]} : vector<32x128xf32> to vector<16x128xf32>
    %10 = vector.extract_strided_slice %8 {offsets = [16, 0], sizes = [16, 128], strides = [1, 1]} : vector<32x128xf32> to vector<16x128xf32>
    %11 = arith.mulf %9, %9 : vector<16x128xf32>
    %12 = arith.mulf %10, %10 : vector<16x128xf32>
    %13 = arith.addf %11, %12 : vector<16x128xf32>
    %c0_10 = arith.constant 0 : index
    %c0_11 = arith.constant 0 : index
    %14 = vector.load %arg6[%c0_10, %c0_11] : memref<8x16xf32, #tpu.memory_space<vmem>>, vector<8x16xf32>
    %cst_12 = arith.constant dense<0.000000e+00> : vector<8x128xf32>
    %15 = tpu.matmul %14, %13, %cst_12 {dimension_numbers = #tpu.dot_dimension_numbers<[1], [0], [0], [1], [0, 0, 1, 1], [], []>} : vector<8x16xf32>, vector<16x128xf32>, vector<8x128xf32> -> vector<8x128xf32>
    %cst_13 = arith.constant 1.000000e-10 : f32
    %16 = vector.broadcast %cst_13 : f32 to vector<8x128xf32>
    %17 = arith.maximumf %16, %15 : vector<8x128xf32>
    %18 = math.log %17 : vector<8x128xf32>
    %cst_14 = arith.constant 0.434294492 : f32
    %19 = vector.broadcast %cst_14 : f32 to vector<8x128xf32>
    %20 = arith.mulf %18, %19 : vector<8x128xf32>
    %c0_15 = arith.constant 0 : index
    %c0_16 = arith.constant 0 : index
    %c0_17 = arith.constant 0 : index
    %21 = vector.load %arg7[%c0_15, %c0_16, %c0_17] : memref<1x8x128xf32, #tpu.memory_space<vmem>>, vector<1x8x128xf32>
    %22 = vector.shape_cast %21 : vector<1x8x128xf32> to vector<8x128xf32>
    %23 = vector.shape_cast %20 : vector<8x128xf32> to vector<1x8x128xf32>
    tpu.vector_store %arg7[%c0_15, %c0_16, %c0_17], %23 {strides = array<i32>} : memref<1x8x128xf32, #tpu.memory_space<vmem>>, vector<1x8x128xf32>,
    return
  }
  func.func @transform_0(%arg0: i32, %arg1: i32) -> (i32, i32, i32) {
    %c0_i32 = arith.constant 0 : i32
    %c0_i32_0 = arith.constant 0 : i32
    return %arg0, %c0_i32, %arg1 : i32, i32, i32
  }
  func.func @transform_1(%arg0: i32, %arg1: i32) -> (i32, i32, i32) {
    %c0_i32 = arith.constant 0 : i32
    %c0_i32_0 = arith.constant 0 : i32
    return %arg0, %c0_i32, %arg1 : i32, i32, i32
  }
  func.func @transform_2(%arg0: i32, %arg1: i32) -> (i32, i32) {
    %c0_i32 = arith.constant 0 : i32
    %c0_i32_0 = arith.constant 0 : i32
    %c0_i32_1 = arith.constant 0 : i32
    return %c0_i32, %c0_i32_0 : i32, i32
  }
  func.func @transform_3(%arg0: i32, %arg1: i32) -> (i32, i32) {
    %c0_i32 = arith.constant 0 : i32
    %c0_i32_0 = arith.constant 0 : i32
    %c0_i32_1 = arith.constant 0 : i32
    return %c0_i32, %c0_i32_0 : i32, i32
  }
  func.func @transform_4(%arg0: i32, %arg1: i32) -> (i32, i32) {
    %c0_i32 = arith.constant 0 : i32
    %c0_i32_0 = arith.constant 0 : i32
    %c0_i32_1 = arith.constant 0 : i32
    return %c0_i32, %c0_i32_0 : i32, i32
  }
  func.func @transform_5(%arg0: i32, %arg1: i32) -> (i32, i32, i32) {
    %c0_i32 = arith.constant 0 : i32
    %c0_i32_0 = arith.constant 0 : i32
    return %arg0, %c0_i32, %arg1 : i32, i32, i32
  }
}

</mosaic_0001>

<bundles_post_ra>
// kernel: tpu_custom_call.1
= control target key start
LH: loop header
LB: loop body
LE: loop exit
PB: predicated region body
PF: predicated region fallthrough
CT: control target
= control target key end

     0   :  { %10 = vsyncpa [#allocation3], 0  ;;  %s1053_s0 = inlined_call_operand.vmem [shape: f32[2,8,128], index: 0, kind: input, shape index: {}]   ;;  %s1054_s1 = inlined_call_operand.vmem [shape: f32[2,8,128], index: 1, kind: input, shape index: {}]   ;;  %s1055_s2 = inlined_call_operand.vmem [shape: f32[32,8], index: 2, kind: input, shape index: {}]   ;;  %s1056_s3 = inlined_call_operand.vmem [shape: f32[32,8], index: 3, kind: input, shape index: {}]   ;;  %s1057_s4 = inlined_call_operand.vmem [shape: f32[8,16], index: 4, kind: input, shape index: {}]   ;;  %s1058_s5 = inlined_call_operand.hbm [shape: f32[2,8,128], index: 5, kind: output, shape index: {}]  }
   0x1   :  { %12 = vsyncpa [#allocation3 + $0x1], 0  ;;  %s903_s18 = smov 0   ;;  %s905_s19 = smov 0  }
   0x2   :  { %s907_s20 = smov 0   ;;  %s909_s21 = smov 0  }
   0x3   :  { %s911_s22 = smov 0   ;;  %s913_s23 = smov 0  }
   0x4 LB: > { %s665_s24 = sadd.s32 4294967295, %s867_s23   ;;  %s666_s25 = sadd.s32 4294967294, %s867_s23   ;;  %s867_s23 = sphi %s913_s23, %s18_s23   ;;  %s863_s22 = sphi %s911_s22, %s1065_s22   ;;  %s859_s21 = sphi %s909_s21, %s1064_s21   ;;  %s855_s20 = sphi %s907_s20, %s1063_s20   ;;  %s851_s19 = sphi %s905_s19, %s1062_s19   ;;  %s847_s18 = sphi %s903_s18, %s1061_s18  }
   0x5   : > { %s30_s26 = sadd.s32 1, %s863_s22  ;;  %s158_s27 = sadd.s32 1, %s855_s20 }
   0x6   : > { %p32_p0 = scmp.ge.s32.totalorder %s30_s26, 2  ;;  %p168_p1 = scmp.ne.s32.totalorder %s855_s20, %s851_s19 }
   0x7   : > { %p169_p2 = scmp.eq.s32.totalorder %s665_s24, 1  ;;  %p174_p3 = scmp.ne.s32.totalorder %s851_s19, %s847_s18 }
   0x8   : > { %s1067_s26 = smov (%p32_p0, %s30_s26), 0  ;;  %p175_p5 = scmp.eq.s32.totalorder %s666_s25, 1 }
   0x9   : > { %p943_p4 = por %p169_p2, %p168_p1  ;;  %s153_s29 = ssub.s32 %s863_s22, %s1067_s26 }
   0xa   : > { %p669_p6 = scmp.ge.s32.totalorder %s867_s23, 1  ;;  %p156_p7 = scmp.eq.s32.totalorder %s153_s29, 0 }
   0xb   : > { %p950_p8 = por %p175_p5, %p174_p3  ;;  %p222_p9 = scmp.lt.s32.totalorder %s867_s23, 3 }
   0xc   : > { %s956_s6 = scalar_select %p156_p7, %s855_s20, %s158_s27  }
   0xd   : > { %p223_p10 = pnand %p669_p6, %p222_p9 }
   0xe   : > { %p259_p11 = scmp.lt.s32.totalorder (!%p223_p10), %s859_s21, 1  ;;  %v279_v0 = vld [vmem:[%s1056_s3] sm:$0xff] (!%p223_p10)  ;;  %vm283_vm0 = vcmask (!%p223_p10), 64512   ;;  %v280_v2 = vld [vmem:[%s1056_s3 + $0x8] sm:$0xff] (!%p223_p10)  ;;  %v281_v6 = vld [vmem:[%s1056_s3 + $0x10] sm:$0xff] (!%p223_p10)  ;;  %v869_v10 = vmov (!%p223_p10), 0.0|0.0  }
   0xf   : > { %226 = sbr.rel (%p223_p10) target bundleno = 501 (0x1f5), region = 40  ;;  %v275_v1 = vld [vmem:[%s1055_s2] sm:$0xff] (!%p223_p10)  ;;  %701 = vmatprep.mubr.msk.f32.mxu1 (!%p223_p10), %vm283_vm0, %v279_v0  ;;  %v276_v5 = vld [vmem:[%s1055_s2 + $0x8] sm:$0xff] (!%p223_p10)  ;;  %v277_v7 = vld [vmem:[%s1055_s2 + $0x10] sm:$0xff] (!%p223_p10)  ;;  %vm870_vm1 = vmmov (!%p223_p10), 0   ;;  %v871_v11 = vmov (!%p223_p10), 0.0  }
  0x10   : > { %709 = vmatprep.mubr.msk.f32.mxu0 (!%p223_p10), %vm283_vm0, %v275_v1  ;;  %v282_v8 = vld [vmem:[%s1056_s3 + $0x18] sm:$0xff] (!%p223_p10)  ;;  %v484_v31 = vld [vmem:[%s1057_s4] sm:$0xff] (!%p223_p10)  ;;  %vm485_vm2 = vcmask (!%p223_p10), 130048   ;;  %s683_s27 = sshll.u32 (!%p223_p10), %s859_s21, 7 }
  0x11   : > { %v278_v9 = vld [vmem:[%s1055_s2 + $0x18] sm:$0xff] (!%p223_p10)  ;;  %s1006_s10 = scalar_lea.hbm (!%p223_p10), %s1058_s5, %s683_s27 }
  0x16   : > { %s260_s11 = scalar_select %p259_p11, %s859_s21, 1 }
  0x17   : > { %s872_s21 = smov [#allocation2]  }
  0x18   : > { %s671_s12 = sshll.u32 %s260_s11, 3  ;;  %s793_s13 = sshll.u32 %s872_s21, 4  ;;  %s794_s13 = int_to_ptr.vmem [resolvable:$false] %s793_s13 }
  0x19   : > { %s272_s15 = scalar_lea.vmem %s1054_s1, %s671_s12  ;;  %s265_s24 = scalar_lea.vmem %s1053_s0, %s671_s12 }
  0x1a   : > { %v274_v3 = vld [vmem:[%s272_s15] sm:$0xff]  ;;  %s795_s14 = scalar_lea.vmem %s794_s13, 256 }
  0x1b   : > { %v273_v4 = vld [vmem:[%s265_s24] sm:$0xff]  ;;  %699 = vmatprep.subr.mxu1 %v274_v3  ;;  %s256_s24 = sand.u32 1, %s851_s19  }
  0x1c   : > { %707 = vmatprep.subr.mxu0 %v273_v4  ;;  %700 = vmatpush3.msra.mxu1 %v274_v3  ;;  %s670_s25 = sshll.u32 %s256_s24, 3  ;;  %s565_s11 = scalar_lea.sflag [#allocation3], %s256_s24 }
  0x1d   : > { %708 = vmatpush3.msra.mxu0 %v273_v4  ;;  %702 = vmatmul.mubr.msk.f32.vlgmr.msra.gmra.mrb[0].mxu1 %vm283_vm0, %v280_v2  ;;  %s258_s29 = scalar_lea.vmem [#allocation2], %s670_s25 }
  0x1e   : > { %710 = vmatmul.mubr.msk.f32.vlgmr.msra.gmra.mrb[0].mxu0 %vm283_vm0, %v276_v5  ;;  %704 = vmatprep.mubr.msk.f32.mxu1 %vm283_vm0, %v281_v6  ;;  %s579_s7 = sshll.u32 %s258_s29, 4  ;;  %s1008_s7 = int_to_ptr.vmem [resolvable:$true] %s579_s7 }
  0x1f   : > { %712 = vmatprep.mubr.msk.f32.mxu0 %vm283_vm0, %v277_v7  ;;  %722 = vmatprep.subr.bf16.mxu1 %v869_v10  ;;  %s789_s12 = scalar_lea.vmem %s1008_s7, 128  ;;  %p796_p1 = scmp.lt.s32.totalorder %s1008_s7, %s794_s13 }
  0x20   : > { %p790_p12 = scmp.ne.s32.totalorder %s1008_s7, %s789_s12  ;;  %p797_p2 = scmp.lt.s32.totalorder %s795_s14, %s789_s12 }
  0x21   : > { %705 = vmatmul.mubr.msk.f32.gmra.mrb[2].mxu1 %vm283_vm0, %v282_v8 }
  0x22   : > { %713 = vmatmul.mubr.msk.f32.gmra.mrb[2].mxu0 %vm283_vm0, %v278_v9  ;;  %719 = vmatprep.mubr.msk.f32.mxu1 %vm870_vm1, %v871_v11  ;;  %p791_p13 = pnand %p790_p12, %p943_p4  ;;  %p798_p3 = por %p797_p2, %p796_p1 }
  0x24   : > { %p792_p0 = pneg %p791_p13 }
  0x26   : > { %p799_p5 = pnand %p798_p3, %p792_p0 }
  0xf0   : > { %v703_v12 = vpop.f32.mrb[0].mxu1 }
  0xf1   : > { %v711_v13 = vpop.f32.mrb[0].mxu0  ;;  %v362_v15 = vpop.f32.mrb[1].mxu1 }
  0xf2   : > { %v465_v14 = vadd.f32 %v711_v13, %v703_v12  ;;  %v459_v16 = vpop.f32.mrb[1].mxu0 }
  0xf3   : > { %v460_v17 = vadd.f32 %v459_v16, %v362_v15 }
  0xf4   : > { %v706_v18 = vpop.f32.mrb[2].mxu1  ;;  %v479_v24 = vmul.f32 %v465_v14, %v465_v14 }
  0xf5   : > { %v714_v19 = vpop.f32.mrb[2].mxu0  ;;  %v372_v21 = vpop.f32.mrb[3].mxu1  ;;  %v478_v26 = vmul.f32 %v460_v17, %v460_v17 }
  0xf6   : > { %v475_v20 = vadd.f32 %v714_v19, %v706_v18  ;;  %v469_v22 = vpop.f32.mrb[3].mxu0 }
  0xf7   : > { %v470_v23 = vadd.f32 %v469_v22, %v372_v21 }
  0xf8   : > { %v481_v25 = vmul.f32 %v475_v20, %v475_v20 }
  0xf9   : > { %v480_v27 = vmul.f32 %v470_v23, %v470_v23 }
  0xfa   : > { %v483_v28 = vadd.f32 %v481_v25, %v479_v24 }
  0xfb   : > { %v482_v29 = vadd.f32 %v480_v27, %v478_v26 }
  0xfd   : > { %v723_v30 = vpack.c.bf16 %v483_v28, %v482_v29 }
  0xff   : > { %724 = vmatpush3.bf16.msra.mxu1 %v723_v30 }
 0x102   : > { %720 = vmatmul.mubr.msk.f32.vlgmr.msra.gmra.mrb[4].mxu1 %vm485_vm2, %v484_v31 }
 0x1d5   : > { %v555_v32 = vpop.f32.mrb[4].mxu1 }
 0x1d6   : > { %v559_v33 = vmax.f32 %v555_v32, 1e-10  ;;  %v721_v34 = vpop.f32.mrb[5].mxu1 }
 0x1d8   : > { %787 = vlog2.f32 %v559_v33 }
 0x1e2   : > { %v788_v35 = vpop.eup %787 }
 0x1e3   : > { %v561_v36 = vmul.f32 0.6931472, %v788_v35 }
 0x1e5   : > { %v562_v37 = vmul.f32 0.4342945, %v561_v36 }
 0x1e7   : > { %563 = vst [vmem:[%s258_s29] sm:$0xff] %v562_v37 }
 0x1e8   : > { %802 = shalt.err (!%p799_p5)
}
 0x1e9   : > { %s803_s15 = scalar_lea.hbm %s1006_s10, 128  ;;  %s807_s24 = scalar_lea.hbm %s1058_s5, 256 }
 0x1ea   : > { %p804_p6 = scmp.ne.s32.totalorder %s1006_s10, %s803_s15  ;;  %p808_p10 = scmp.lt.u32.totalorder %s1006_s10, %s1058_s5 }
 0x1eb   : > { %p809_p11 = scmp.lt.u32.totalorder %s807_s24, %s803_s15  ;;  %p811_p13 = scmp.lt.u32.totalorder %s803_s15, %s1006_s10 }
 0x1ec   : > { %p805_p7 = pnand %p804_p6, %p943_p4 }
 0x1ed   : > { %p810_p12 = por %p809_p11, %p808_p10 }
 0x1ee   : > { %p806_p9 = pneg %p805_p7 }
 0x1ef   : > { %p812_p0 = por %p811_p13, %p810_p12 }
 0x1f1   : > { %p813_p1 = pnand %p812_p0, %p806_p9 }
 0x1f3   : > { %816 = shalt.err (!%p813_p1)
}
 0x1f4   : > { %729 = dma.vmem_to_hbm [thread:$0]  (%p943_p4), %s1008_s7, 128, %s1006_s10, %s565_s11  }
 0x1f5 PF: > { %p735_p2 = scmp.ge.s32.totalorder %s867_s23, 2  ;;  %s591_s29 = sand.u32 1, %s847_s18  }
 0x1f6   : > { %s592_s8 = scalar_lea.sflag [#allocation3], %s591_s29 }
 0x1f7   : > { %p732_p3 = pnand %p735_p2, %p950_p8 }
 0x1f9   : > { %842 = dma.done.wait (!%p732_p3), %s592_s8, 128  }
 0x1fa   : > { %844 = vsyncadd (!%p732_p3), %s592_s8, 4294967168  ;;  %s18_s23 = sadd.s32 1, %s867_s23   ;;  %s1061_s18 = smov %s851_s19 }
 0x1fb   : > { %p15_p5 = scmp.ge.s32.totalorder %s18_s23, 4   ;;  %s1062_s19 = smov %s855_s20 }
 0x1fc   : > { %s1063_s20 = smov %s956_s6  ;;  %s1064_s21 = smov %s863_s22 }
 0x1fd   : > { %s1065_s22 = smov %s1067_s26  ;;  %17 = sbr.rel (!%p15_p5) target bundleno = 4 (0x4), region = 78 }
 0x204   :  { %597 = vsyncpa [#allocation3], 1 }
 0x205   :  { %599 = vsyncpa [#allocation3 + $0x1], 1 }

</bundles_post_ra>
